<compile_context>
chip_gen: v6e
topology: v6e:2x2x1
jax: 0.10.0
libtpu: 0.0.40
codegen_flags: <defaults>
</compile_context>

<pallas_src>
import math
import functools

import jax
import jax.numpy as jnp
from jax.experimental import pallas as pl
from jax.experimental.pallas import tpu as pltpu


# ----------------------------------------------------------------------------
# Fused MAB kernel: one program = (one batch block, one query tile).
# ----------------------------------------------------------------------------
def _mab_fused_kernel(x_ref, y_ref, wq_ref, bq_ref, wkv_ref, bkv_ref,
                      wo_ref, bo_ref, o_ref, kv_ref, *, num_heads, vdim, bblk):
    bf16 = jnp.bfloat16
    ds = vdim // num_heads
    nk = y_ref.shape[1]
    tq = x_ref.shape[1]

    # ---- K|V projection: once per batch block, cached in the VMEM scratch. ----
    # (qt is the minor, "arbitrary" grid axis; scratch persists across it.)
    @pl.when(pl.program_id(1) == 0)
    def _():
        y2d = y_ref[...].reshape(bblk * nk, y_ref.shape[2]).astype(bf16)
        kv = jnp.dot(y2d, wkv_ref[...],
                     preferred_element_type=jnp.float32) + bkv_ref[...]
        kv_ref[...] = kv.reshape(bblk, nk, 2 * vdim)

    # ---- Q projection for this query tile (bf16 in, f32 accumulate). ----
    x2d = x_ref[...].reshape(bblk * tq, x_ref.shape[2]).astype(bf16)
    q = jnp.dot(x2d, wq_ref[...],
                preferred_element_type=jnp.float32) + bq_ref[...]
    q = q.reshape(bblk, tq, vdim)          # f32, UNscaled (needed for residual)

    kv = kv_ref[...]                        # f32
    k = kv[:, :, :vdim]                     # already pre-scaled by 1/sqrt(ds)
    v = kv[:, :, vdim:]

    # ---- Per-head attention; head h = contiguous feature slice [h*ds,(h+1)*ds)
    # (matches torch split(dim_split, 2) + cat(0) ordering).  Static loop: H is
    # tiny here.  At production sizes pick ds >= 128 so these matmuls fill the
    # MXU contraction lanes.
    head_outs = []
    for h in range(num_heads):
        sl = slice(h * ds, (h + 1) * ds)
        qh = q[:, :, sl]                    # [bblk, tq, ds] f32
        kh = k[:, :, sl]                    # [bblk, Nk, ds] f32 (scaled)
        vh = v[:, :, sl]                    # [bblk, Nk, ds] f32

        s = jnp.einsum('bqd,bkd->bqk', qh.astype(bf16), kh.astype(bf16),
                       preferred_element_type=jnp.float32)   # [bblk, tq, Nk]
        s = s - jnp.max(s, axis=-1, keepdims=True)            # f32 softmax
        e = jnp.exp(s)
        p = e * pl.reciprocal(jnp.sum(e, axis=-1, keepdims=True), approx=True)

        pv = jnp.einsum('bqk,bkd->bqd', p.astype(bf16), vh.astype(bf16),
                        preferred_element_type=jnp.float32)
        head_outs.append(qh + pv)           # residual uses unscaled qh (f32)

    o = jnp.concatenate(head_outs, axis=-1)  # [bblk, tq, Vdim] lane-dense slab

    # ---- Output projection. ----
    o2d = o.reshape(bblk * tq, vdim).astype(bf16)
    out = jnp.dot(o2d, wo_ref[...],
                  preferred_element_type=jnp.float32) + bo_ref[...]
    o_ref[...] = out.reshape(bblk, tq, vdim).astype(o_ref.dtype)


# ----------------------------------------------------------------------------
# One-time parameter preparation (NOT per forward call):
#   - fuse K|V projection weights/biases into one slab (shared LHS = Y),
#   - fold the 1/sqrt(dim_split) score scale into the K projection,
#   - cast weights to bf16 for the MXU (biases stay f32).
# ----------------------------------------------------------------------------
def prepare_mab_params(params, num_heads):
    vdim = params["WQ"].shape[1]
    assert vdim % num_heads == 0, "Vdim must be divisible by num_heads"
    scale = 1.0 / math.sqrt(vdim // num_heads)
    wkv = jnp.concatenate([params["WK"] * scale, params["WV"]], axis=1)
    bkv = jnp.concatenate([params["bK"] * scale, params["bV"]], axis=0)
    return {
        "WQ": params["WQ"].astype(jnp.bfloat16),
        "bQ": params["bQ"].reshape(1, vdim).astype(jnp.float32),
        "WKV": wkv.astype(jnp.bfloat16),
        "bKV": bkv.reshape(1, 2 * vdim).astype(jnp.float32),
        "WO": params["WO"].astype(jnp.bfloat16),
        "bO": params["bO"].reshape(1, vdim).astype(jnp.float32),
        "num_heads": num_heads,
        "Vdim": vdim,
    }


def _pick_batch_block(B, target=8):
    # Pack several batch elements per grid step (bigger matmul M, fewer steps),
    # but keep >= 2 batch blocks whenever B >= 2 so both v7x TCs get work.
    best = 1
    for cand in range(1, min(B, target) + 1):
        if B % cand == 0 and B // cand >= 2:
            best = cand
    return best if B >= 2 else 1


# ----------------------------------------------------------------------------
# Full MAB forward (use_ln=False path), single pallas_call.
# ----------------------------------------------------------------------------
def mab_forward(X, Y, prepared, *, q_tile=256):
    B, Nq, Qdim = X.shape
    By, Nk, Kdim = Y.shape
    assert By == B
    vdim = prepared["Vdim"]
    num_heads = prepared["num_heads"]

    bblk = _pick_batch_block(B)
    nb = B // bblk
    # v6e (128 MiB VMEM): tq up to 256-512 is fine; v7x (64 MiB): re-derive so
    # weights + KV scratch + double-buffered X/out tiles stay under budget.
    tq = min(Nq, q_tile)
    nqt = pl.cdiv(Nq, tq)

    kernel = functools.partial(_mab_fused_kernel, num_heads=num_heads,
                               vdim=vdim, bblk=bblk)

    return pl.pallas_call(
        kernel,
        out_shape=jax.ShapeDtypeStruct((B, Nq, vdim), X.dtype),
        grid=(nb, nqt),
        in_specs=[
            pl.BlockSpec((bblk, tq, Qdim), lambda b, qt: (b, qt, 0)),     # X tile
            pl.BlockSpec((bblk, Nk, Kdim), lambda b, qt: (b, 0, 0)),      # Y (DMA skipped over qt)
            pl.BlockSpec((Qdim, vdim), lambda b, qt: (0, 0)),             # WQ  (bf16, invariant)
            pl.BlockSpec((1, vdim), lambda b, qt: (0, 0)),                # bQ  (f32)
            pl.BlockSpec((Kdim, 2 * vdim), lambda b, qt: (0, 0)),         # WK|WV (bf16, K pre-scaled)
            pl.BlockSpec((1, 2 * vdim), lambda b, qt: (0, 0)),            # bK|bV (f32)
            pl.BlockSpec((vdim, vdim), lambda b, qt: (0, 0)),             # WO  (bf16)
            pl.BlockSpec((1, vdim), lambda b, qt: (0, 0)),                # bO  (f32)
        ],
        out_specs=pl.BlockSpec((bblk, tq, vdim), lambda b, qt: (b, qt, 0)),
        scratch_shapes=[pltpu.VMEM((bblk, Nk, 2 * vdim), jnp.float32)],   # KV cache
        compiler_params=pltpu.CompilerParams(
            # Batch axis parallel (megacore / v7x 2 TCs); query-tile axis is
            # "arbitrary" because the KV scratch is reused across query tiles.
            dimension_semantics=("parallel", "arbitrary"),
            vmem_limit_bytes=32 * 1024 * 1024,
        ),
    )(X, Y, prepared["WQ"], prepared["bQ"], prepared["WKV"], prepared["bKV"],
      prepared["WO"], prepared["bO"])


# ----------------------------------------------------------------------------
# Pure-JAX references.
# ----------------------------------------------------------------------------
def mab_reference_f32(X, Y, params, num_heads):
    """Exact f32 mirror of the PyTorch module (use_ln=False)."""
    Q = X @ params["WQ"] + params["bQ"]
    K = Y @ params["WK"] + params["bK"]
    V = Y @ params["WV"] + params["bV"]
    vdim = Q.shape[-1]
    ds = vdim // num_heads
    Qs = jnp.concatenate(jnp.split(Q, num_heads, axis=2), axis=0)
    Ks = jnp.concatenate(jnp.split(K, num_heads, axis=2), axis=0)
    Vs = jnp.concatenate(jnp.split(V, num_heads, axis=2), axis=0)
    attn = jax.nn.softmax(jnp.einsum("bqd,bkd->bqk", Qs, Ks) / math.sqrt(ds), axis=-1)
    O = Qs + jnp.einsum("bqk,bkd->bqd", attn, Vs)
    O = jnp.concatenate(jnp.split(O, num_heads, axis=0), axis=2)
    return O @ params["WO"] + params["bO"]


def mab_reference_bf16(X, Y, prepared):
    """Pure-JAX reference with the SAME bf16-in / f32-accumulate numerics as the
    kernel (tight check; the only remaining delta is the approx reciprocal)."""
    bf16 = jnp.bfloat16
    num_heads, vdim = prepared["num_heads"], prepared["Vdim"]
    ds = vdim // num_heads
    Q = jnp.einsum("bnk,kv->bnv", X.astype(bf16), prepared["WQ"],
                   preferred_element_type=jnp.float32) + prepared["bQ"]
    KV = jnp.einsum("bnk,kv->bnv", Y.astype(bf16), prepared["WKV"],
                    preferred_element_type=jnp.float32) + prepared["bKV"]
    K, V = KV[..., :vdim], KV[..., vdim:]
    outs = []
    for h in range(num_heads):
        sl = slice(h * ds, (h + 1) * ds)
        qh, kh, vh = Q[..., sl], K[..., sl], V[..., sl]
        s = jnp.einsum("bqd,bkd->bqk", qh.astype(bf16), kh.astype(bf16),
                       preferred_element_type=jnp.float32)
        p = jax.nn.softmax(s, axis=-1)
        outs.append(qh + jnp.einsum("bqk,bkd->bqd", p.astype(bf16), vh.astype(bf16),
                                    preferred_element_type=jnp.float32))
    O = jnp.concatenate(outs, axis=-1)
    return jnp.einsum("bnv,vw->bnw", O.astype(bf16), prepared["WO"],
                      preferred_element_type=jnp.float32) + prepared["bO"]


if __name__ == "__main__":
    # Small shapes consistent with the module's forward.
    B, Nq, Nk = 2, 8, 16
    Qdim, Kdim, Vdim, H = 24, 20, 32, 4

    key = jax.random.PRNGKey(0)
    ks = jax.random.split(key, 10)

    X = jax.random.normal(ks[0], (B, Nq, Qdim), jnp.float32)
    Y = jax.random.normal(ks[1], (B, Nk, Kdim), jnp.float32)

    def init_linear(kw, kb, din, dout):
        bound = 1.0 / math.sqrt(din)
        w = jax.random.uniform(kw, (din, dout), jnp.float32, -bound, bound)
        b = jax.random.uniform(kb, (dout,), jnp.float32, -bound, bound)
        return w, b

    WQ, bQ = init_linear(ks[2], ks[3], Qdim, Vdim)
    WK, bK = init_linear(ks[4], ks[5], Kdim, Vdim)
    WV, bV = init_linear(ks[6], ks[7], Kdim, Vdim)
    WO, bO = init_linear(ks[8], ks[9], Vdim, Vdim)

    params = dict(WQ=WQ, bQ=bQ, WK=WK, bK=bK, WV=WV, bV=bV, WO=WO, bO=bO)
    prepared = prepare_mab_params(params, H)   # one-time param prep

    out = jax.block_until_ready(mab_forward(X, Y, prepared))
    assert out.shape == (B, Nq, Vdim), out.shape

    # Tight check: identical bf16-matmul numerics (delta ~= approx reciprocal).
    ref_b = jax.block_until_ready(mab_reference_bf16(X, Y, prepared))
    err_b = float(jnp.max(jnp.abs(out - ref_b)))
    assert err_b < 3e-3, err_b

    # Semantic check vs. the exact f32 module; tolerance covers bf16 matmul error.
    ref_f = jax.block_until_ready(mab_reference_f32(X, Y, params, H))
    err_f = float(jnp.max(jnp.abs(out - ref_f)))
    assert err_f < 1e-1, err_f

    print("KERNEL_OK")
</pallas_src>

<mosaic_0001>
module attributes {stable_mosaic.version = 11 : i64} {
  func.func @_mab_fused_kernel(%arg0: i32, %arg1: i32, %arg2: memref<1x8x24xf32, #tpu.memory_space<vmem>>, %arg3: memref<1x16x20xf32, #tpu.memory_space<vmem>>, %arg4: memref<24x32xbf16, #tpu.memory_space<vmem>>, %arg5: memref<1x32xf32, #tpu.memory_space<vmem>>, %arg6: memref<20x64xbf16, #tpu.memory_space<vmem>>, %arg7: memref<1x64xf32, #tpu.memory_space<vmem>>, %arg8: memref<32x32xbf16, #tpu.memory_space<vmem>>, %arg9: memref<1x32xf32, #tpu.memory_space<vmem>>, %arg10: memref<1x8x32xf32, #tpu.memory_space<vmem>>, %arg11: memref<1x16x64xf32, #tpu.memory_space<vmem>>) attributes {dimension_semantics = [#tpu.dimension_semantics<parallel>, #tpu.dimension_semantics<arbitrary>], iteration_bounds = array<i64: 2, 1>, scalar_prefetch = 0 : i64, scratch_operands = 1 : i64, tpu.core_type = #tpu.core_type<tc>, window_params = [{transform_indices = @transform_0, window_bounds = array<i64: 1, 8, 24>}, {transform_indices = @transform_1, window_bounds = array<i64: 1, 16, 20>}, {pipeline_mode = #tpu.pipeline_mode<synchronous>, transform_indices = @transform_2, window_bounds = array<i64: 24, 32>}, {pipeline_mode = #tpu.pipeline_mode<synchronous>, transform_indices = @transform_3, window_bounds = array<i64: 1, 32>}, {pipeline_mode = #tpu.pipeline_mode<synchronous>, transform_indices = @transform_4, window_bounds = array<i64: 20, 64>}, {pipeline_mode = #tpu.pipeline_mode<synchronous>, transform_indices = @transform_5, window_bounds = array<i64: 1, 64>}, {pipeline_mode = #tpu.pipeline_mode<synchronous>, transform_indices = @transform_6, window_bounds = array<i64: 32, 32>}, {pipeline_mode = #tpu.pipeline_mode<synchronous>, transform_indices = @transform_7, window_bounds = array<i64: 1, 32>}, {transform_indices = @transform_8, window_bounds = array<i64: 1, 8, 32>}]} {
    %c0_i32 = arith.constant 0 : i32
    %0 = arith.cmpi eq, %arg1, %c0_i32 : i32
    %1 = arith.extui %0 : i1 to i32
    %c0_i32_0 = arith.constant 0 : i32
    %2 = arith.cmpi ne, %1, %c0_i32_0 : i32
    scf.if %2 {
      %c0_34 = arith.constant 0 : index
      %c0_35 = arith.constant 0 : index
      %c0_36 = arith.constant 0 : index
      %105 = vector.load %arg3[%c0_34, %c0_35, %c0_36] : memref<1x16x20xf32, #tpu.memory_space<vmem>>, vector<1x16x20xf32>
      %106 = vector.shape_cast %105 : vector<1x16x20xf32> to vector<16x20xf32>
      %107 = arith.truncf %106 : vector<16x20xf32> to vector<16x20xbf16>
      %c0_37 = arith.constant 0 : index
      %c0_38 = arith.constant 0 : index
      %108 = vector.load %arg6[%c0_37, %c0_38] : memref<20x64xbf16, #tpu.memory_space<vmem>>, vector<20x64xbf16>
      %cst_39 = arith.constant dense<0.000000e+00> : vector<16x64xf32>
      %109 = tpu.matmul %107, %108, %cst_39 {dimension_numbers = #tpu.dot_dimension_numbers<[1], [0], [0], [1], [0, 0, 1, 1], [], []>} : vector<16x20xbf16>, vector<20x64xbf16>, vector<16x64xf32> -> vector<16x64xf32>
      %c0_40 = arith.constant 0 : index
      %c0_41 = arith.constant 0 : index
      %110 = vector.load %arg7[%c0_40, %c0_41] : memref<1x64xf32, #tpu.memory_space<vmem>>, vector<1x64xf32>
      %111 = vector.broadcast %110 : vector<1x64xf32> to vector<16x64xf32>
      %112 = arith.addf %109, %111 : vector<16x64xf32>
      %113 = vector.shape_cast %112 : vector<16x64xf32> to vector<1x16x64xf32>
      %c0_42 = arith.constant 0 : index
      %c0_43 = arith.constant 0 : index
      %c0_44 = arith.constant 0 : index
      %114 = vector.load %arg11[%c0_42, %c0_43, %c0_44] : memref<1x16x64xf32, #tpu.memory_space<vmem>>, vector<1x16x64xf32>
      tpu.vector_store %arg11[%c0_42, %c0_43, %c0_44], %113 {strides = array<i32>} : memref<1x16x64xf32, #tpu.memory_space<vmem>>, vector<1x16x64xf32>,
    } else {
    }
    %c0 = arith.constant 0 : index
    %c0_1 = arith.constant 0 : index
    %c0_2 = arith.constant 0 : index
    %3 = vector.load %arg2[%c0, %c0_1, %c0_2] : memref<1x8x24xf32, #tpu.memory_space<vmem>>, vector<1x8x24xf32>
    %4 = vector.shape_cast %3 : vector<1x8x24xf32> to vector<8x24xf32>
    %5 = arith.truncf %4 : vector<8x24xf32> to vector<8x24xbf16>
    %c0_3 = arith.constant 0 : index
    %c0_4 = arith.constant 0 : index
    %6 = vector.load %arg4[%c0_3, %c0_4] : memref<24x32xbf16, #tpu.memory_space<vmem>>, vector<24x32xbf16>
    %cst = arith.constant dense<0.000000e+00> : vector<8x32xf32>
    %7 = tpu.matmul %5, %6, %cst {dimension_numbers = #tpu.dot_dimension_numbers<[1], [0], [0], [1], [0, 0, 1, 1], [], []>} : vector<8x24xbf16>, vector<24x32xbf16>, vector<8x32xf32> -> vector<8x32xf32>
    %c0_5 = arith.constant 0 : index
    %c0_6 = arith.constant 0 : index
    %8 = vector.load %arg5[%c0_5, %c0_6] : memref<1x32xf32, #tpu.memory_space<vmem>>, vector<1x32xf32>
    %9 = vector.broadcast %8 : vector<1x32xf32> to vector<8x32xf32>
    %10 = arith.addf %7, %9 : vector<8x32xf32>
    %11 = vector.shape_cast %10 : vector<8x32xf32> to vector<1x8x32xf32>
    %c0_7 = arith.constant 0 : index
    %c0_8 = arith.constant 0 : index
    %c0_9 = arith.constant 0 : index
    %12 = vector.load %arg11[%c0_7, %c0_8, %c0_9] : memref<1x16x64xf32, #tpu.memory_space<vmem>>, vector<1x16x64xf32>
    %13 = vector.extract_strided_slice %12 {offsets = [0, 0, 0], sizes = [1, 16, 32], strides = [1, 1, 1]} : vector<1x16x64xf32> to vector<1x16x32xf32>
    %14 = vector.extract_strided_slice %12 {offsets = [0, 0, 32], sizes = [1, 16, 32], strides = [1, 1, 1]} : vector<1x16x64xf32> to vector<1x16x32xf32>
    %15 = vector.extract_strided_slice %11 {offsets = [0, 0, 0], sizes = [1, 8, 8], strides = [1, 1, 1]} : vector<1x8x32xf32> to vector<1x8x8xf32>
    %16 = vector.extract_strided_slice %13 {offsets = [0, 0, 0], sizes = [1, 16, 8], strides = [1, 1, 1]} : vector<1x16x32xf32> to vector<1x16x8xf32>
    %17 = vector.extract_strided_slice %14 {offsets = [0, 0, 0], sizes = [1, 16, 8], strides = [1, 1, 1]} : vector<1x16x32xf32> to vector<1x16x8xf32>
    %18 = arith.truncf %15 : vector<1x8x8xf32> to vector<1x8x8xbf16>
    %19 = arith.truncf %16 : vector<1x16x8xf32> to vector<1x16x8xbf16>
    "tpu.trace_start"() <{level = 10 : i32, message = "bqd,bkd->bqk"}> : () -> ()
    %cst_10 = arith.constant dense<0.000000e+00> : vector<1x8x16xf32>
    %20 = tpu.matmul %18, %19, %cst_10 {dimension_numbers = #tpu.dot_dimension_numbers<[2], [2], [1], [1], [0, 0, 0, 1, 1, 1], [0], [0]>} : vector<1x8x8xbf16>, vector<1x16x8xbf16>, vector<1x8x16xf32> -> vector<1x8x16xf32>
    "tpu.trace_stop"() : () -> ()
    %cst_11 = arith.constant dense<0xFF800000> : vector<1x8xf32>
    %21 = vector.multi_reduction <maximumf>, %20, %cst_11 [2] : vector<1x8x16xf32> to vector<1x8xf32>
    %22 = vector.shape_cast %21 : vector<1x8xf32> to vector<1x8x1xf32>
    %23 = vector.broadcast %22 : vector<1x8x1xf32> to vector<1x8x16xf32>
    %24 = arith.subf %20, %23 : vector<1x8x16xf32>
    %25 = math.exp %24 : vector<1x8x16xf32>
    %cst_12 = arith.constant dense<0.000000e+00> : vector<1x8xf32>
    %26 = vector.multi_reduction <add>, %25, %cst_12 [2] : vector<1x8x16xf32> to vector<1x8xf32>
    %27 = vector.shape_cast %26 : vector<1x8xf32> to vector<1x8x1xf32>
    %28 = tpu.reciprocal %27 {approx = true} : vector<1x8x1xf32> -> vector<1x8x1xf32>
    %29 = vector.broadcast %28 : vector<1x8x1xf32> to vector<1x8x16xf32>
    %30 = arith.mulf %25, %29 : vector<1x8x16xf32>
    %31 = arith.truncf %30 : vector<1x8x16xf32> to vector<1x8x16xbf16>
    %32 = arith.truncf %17 : vector<1x16x8xf32> to vector<1x16x8xbf16>
    "tpu.trace_start"() <{level = 10 : i32, message = "bqk,bkd->bqd"}> : () -> ()
    %cst_13 = arith.constant dense<0.000000e+00> : vector<1x8x8xf32>
    %33 = tpu.matmul %31, %32, %cst_13 {dimension_numbers = #tpu.dot_dimension_numbers<[2], [1], [1], [2], [0, 0, 0, 1, 1, 2], [0], [0]>} : vector<1x8x16xbf16>, vector<1x16x8xbf16>, vector<1x8x8xf32> -> vector<1x8x8xf32>
    "tpu.trace_stop"() : () -> ()
    %34 = arith.addf %15, %33 : vector<1x8x8xf32>
    %35 = vector.extract_strided_slice %11 {offsets = [0, 0, 8], sizes = [1, 8, 8], strides = [1, 1, 1]} : vector<1x8x32xf32> to vector<1x8x8xf32>
    %36 = vector.extract_strided_slice %13 {offsets = [0, 0, 8], sizes = [1, 16, 8], strides = [1, 1, 1]} : vector<1x16x32xf32> to vector<1x16x8xf32>
    %37 = vector.extract_strided_slice %14 {offsets = [0, 0, 8], sizes = [1, 16, 8], strides = [1, 1, 1]} : vector<1x16x32xf32> to vector<1x16x8xf32>
    %38 = arith.truncf %35 : vector<1x8x8xf32> to vector<1x8x8xbf16>
    %39 = arith.truncf %36 : vector<1x16x8xf32> to vector<1x16x8xbf16>
    "tpu.trace_start"() <{level = 10 : i32, message = "bqd,bkd->bqk"}> : () -> ()
    %cst_14 = arith.constant dense<0.000000e+00> : vector<1x8x16xf32>
    %40 = tpu.matmul %38, %39, %cst_14 {dimension_numbers = #tpu.dot_dimension_numbers<[2], [2], [1], [1], [0, 0, 0, 1, 1, 1], [0], [0]>} : vector<1x8x8xbf16>, vector<1x16x8xbf16>, vector<1x8x16xf32> -> vector<1x8x16xf32>
    "tpu.trace_stop"() : () -> ()
    %cst_15 = arith.constant dense<0xFF800000> : vector<1x8xf32>
    %41 = vector.multi_reduction <maximumf>, %40, %cst_15 [2] : vector<1x8x16xf32> to vector<1x8xf32>
    %42 = vector.shape_cast %41 : vector<1x8xf32> to vector<1x8x1xf32>
    %43 = vector.broadcast %42 : vector<1x8x1xf32> to vector<1x8x16xf32>
    %44 = arith.subf %40, %43 : vector<1x8x16xf32>
    %45 = math.exp %44 : vector<1x8x16xf32>
    %cst_16 = arith.constant dense<0.000000e+00> : vector<1x8xf32>
    %46 = vector.multi_reduction <add>, %45, %cst_16 [2] : vector<1x8x16xf32> to vector<1x8xf32>
    %47 = vector.shape_cast %46 : vector<1x8xf32> to vector<1x8x1xf32>
    %48 = tpu.reciprocal %47 {approx = true} : vector<1x8x1xf32> -> vector<1x8x1xf32>
    %49 = vector.broadcast %48 : vector<1x8x1xf32> to vector<1x8x16xf32>
    %50 = arith.mulf %45, %49 : vector<1x8x16xf32>
    %51 = arith.truncf %50 : vector<1x8x16xf32> to vector<1x8x16xbf16>
    %52 = arith.truncf %37 : vector<1x16x8xf32> to vector<1x16x8xbf16>
    "tpu.trace_start"() <{level = 10 : i32, message = "bqk,bkd->bqd"}> : () -> ()
    %cst_17 = arith.constant dense<0.000000e+00> : vector<1x8x8xf32>
    %53 = tpu.matmul %51, %52, %cst_17 {dimension_numbers = #tpu.dot_dimension_numbers<[2], [1], [1], [2], [0, 0, 0, 1, 1, 2], [0], [0]>} : vector<1x8x16xbf16>, vector<1x16x8xbf16>, vector<1x8x8xf32> -> vector<1x8x8xf32>
    "tpu.trace_stop"() : () -> ()
    %54 = arith.addf %35, %53 : vector<1x8x8xf32>
    %55 = vector.extract_strided_slice %11 {offsets = [0, 0, 16], sizes = [1, 8, 8], strides = [1, 1, 1]} : vector<1x8x32xf32> to vector<1x8x8xf32>
    %56 = vector.extract_strided_slice %13 {offsets = [0, 0, 16], sizes = [1, 16, 8], strides = [1, 1, 1]} : vector<1x16x32xf32> to vector<1x16x8xf32>
    %57 = vector.extract_strided_slice %14 {offsets = [0, 0, 16], sizes = [1, 16, 8], strides = [1, 1, 1]} : vector<1x16x32xf32> to vector<1x16x8xf32>
    %58 = arith.truncf %55 : vector<1x8x8xf32> to vector<1x8x8xbf16>
    %59 = arith.truncf %56 : vector<1x16x8xf32> to vector<1x16x8xbf16>
    "tpu.trace_start"() <{level = 10 : i32, message = "bqd,bkd->bqk"}> : () -> ()
    %cst_18 = arith.constant dense<0.000000e+00> : vector<1x8x16xf32>
    %60 = tpu.matmul %58, %59, %cst_18 {dimension_numbers = #tpu.dot_dimension_numbers<[2], [2], [1], [1], [0, 0, 0, 1, 1, 1], [0], [0]>} : vector<1x8x8xbf16>, vector<1x16x8xbf16>, vector<1x8x16xf32> -> vector<1x8x16xf32>
    "tpu.trace_stop"() : () -> ()
    %cst_19 = arith.constant dense<0xFF800000> : vector<1x8xf32>
    %61 = vector.multi_reduction <maximumf>, %60, %cst_19 [2] : vector<1x8x16xf32> to vector<1x8xf32>
    %62 = vector.shape_cast %61 : vector<1x8xf32> to vector<1x8x1xf32>
    %63 = vector.broadcast %62 : vector<1x8x1xf32> to vector<1x8x16xf32>
    %64 = arith.subf %60, %63 : vector<1x8x16xf32>
    %65 = math.exp %64 : vector<1x8x16xf32>
    %cst_20 = arith.constant dense<0.000000e+00> : vector<1x8xf32>
    %66 = vector.multi_reduction <add>, %65, %cst_20 [2] : vector<1x8x16xf32> to vector<1x8xf32>
    %67 = vector.shape_cast %66 : vector<1x8xf32> to vector<1x8x1xf32>
    %68 = tpu.reciprocal %67 {approx = true} : vector<1x8x1xf32> -> vector<1x8x1xf32>
    %69 = vector.broadcast %68 : vector<1x8x1xf32> to vector<1x8x16xf32>
    %70 = arith.mulf %65, %69 : vector<1x8x16xf32>
    %71 = arith.truncf %70 : vector<1x8x16xf32> to vector<1x8x16xbf16>
    %72 = arith.truncf %57 : vector<1x16x8xf32> to vector<1x16x8xbf16>
    "tpu.trace_start"() <{level = 10 : i32, message = "bqk,bkd->bqd"}> : () -> ()
    %cst_21 = arith.constant dense<0.000000e+00> : vector<1x8x8xf32>
    %73 = tpu.matmul %71, %72, %cst_21 {dimension_numbers = #tpu.dot_dimension_numbers<[2], [1], [1], [2], [0, 0, 0, 1, 1, 2], [0], [0]>} : vector<1x8x16xbf16>, vector<1x16x8xbf16>, vector<1x8x8xf32> -> vector<1x8x8xf32>
    "tpu.trace_stop"() : () -> ()
    %74 = arith.addf %55, %73 : vector<1x8x8xf32>
    %75 = vector.extract_strided_slice %11 {offsets = [0, 0, 24], sizes = [1, 8, 8], strides = [1, 1, 1]} : vector<1x8x32xf32> to vector<1x8x8xf32>
    %76 = vector.extract_strided_slice %13 {offsets = [0, 0, 24], sizes = [1, 16, 8], strides = [1, 1, 1]} : vector<1x16x32xf32> to vector<1x16x8xf32>
    %77 = vector.extract_strided_slice %14 {offsets = [0, 0, 24], sizes = [1, 16, 8], strides = [1, 1, 1]} : vector<1x16x32xf32> to vector<1x16x8xf32>
    %78 = arith.truncf %75 : vector<1x8x8xf32> to vector<1x8x8xbf16>
    %79 = arith.truncf %76 : vector<1x16x8xf32> to vector<1x16x8xbf16>
    "tpu.trace_start"() <{level = 10 : i32, message = "bqd,bkd->bqk"}> : () -> ()
    %cst_22 = arith.constant dense<0.000000e+00> : vector<1x8x16xf32>
    %80 = tpu.matmul %78, %79, %cst_22 {dimension_numbers = #tpu.dot_dimension_numbers<[2], [2], [1], [1], [0, 0, 0, 1, 1, 1], [0], [0]>} : vector<1x8x8xbf16>, vector<1x16x8xbf16>, vector<1x8x16xf32> -> vector<1x8x16xf32>
    "tpu.trace_stop"() : () -> ()
    %cst_23 = arith.constant dense<0xFF800000> : vector<1x8xf32>
    %81 = vector.multi_reduction <maximumf>, %80, %cst_23 [2] : vector<1x8x16xf32> to vector<1x8xf32>
    %82 = vector.shape_cast %81 : vector<1x8xf32> to vector<1x8x1xf32>
    %83 = vector.broadcast %82 : vector<1x8x1xf32> to vector<1x8x16xf32>
    %84 = arith.subf %80, %83 : vector<1x8x16xf32>
    %85 = math.exp %84 : vector<1x8x16xf32>
    %cst_24 = arith.constant dense<0.000000e+00> : vector<1x8xf32>
    %86 = vector.multi_reduction <add>, %85, %cst_24 [2] : vector<1x8x16xf32> to vector<1x8xf32>
    %87 = vector.shape_cast %86 : vector<1x8xf32> to vector<1x8x1xf32>
    %88 = tpu.reciprocal %87 {approx = true} : vector<1x8x1xf32> -> vector<1x8x1xf32>
    %89 = vector.broadcast %88 : vector<1x8x1xf32> to vector<1x8x16xf32>
    %90 = arith.mulf %85, %89 : vector<1x8x16xf32>
    %91 = arith.truncf %90 : vector<1x8x16xf32> to vector<1x8x16xbf16>
    %92 = arith.truncf %77 : vector<1x16x8xf32> to vector<1x16x8xbf16>
    "tpu.trace_start"() <{level = 10 : i32, message = "bqk,bkd->bqd"}> : () -> ()
    %cst_25 = arith.constant dense<0.000000e+00> : vector<1x8x8xf32>
    %93 = tpu.matmul %91, %92, %cst_25 {dimension_numbers = #tpu.dot_dimension_numbers<[2], [1], [1], [2], [0, 0, 0, 1, 1, 2], [0], [0]>} : vector<1x8x16xbf16>, vector<1x16x8xbf16>, vector<1x8x8xf32> -> vector<1x8x8xf32>
    "tpu.trace_stop"() : () -> ()
    %94 = arith.addf %75, %93 : vector<1x8x8xf32>
    %95 = tpu.concatenate %34, %54, %74, %94 in 2 : vector<1x8x8xf32>, vector<1x8x8xf32>, vector<1x8x8xf32>, vector<1x8x8xf32> -> vector<1x8x32xf32>
    %96 = vector.shape_cast %95 : vector<1x8x32xf32> to vector<8x32xf32>
    %97 = arith.truncf %96 : vector<8x32xf32> to vector<8x32xbf16>
    %c0_26 = arith.constant 0 : index
    %c0_27 = arith.constant 0 : index
    %98 = vector.load %arg8[%c0_26, %c0_27] : memref<32x32xbf16, #tpu.memory_space<vmem>>, vector<32x32xbf16>
    %cst_28 = arith.constant dense<0.000000e+00> : vector<8x32xf32>
    %99 = tpu.matmul %97, %98, %cst_28 {dimension_numbers = #tpu.dot_dimension_numbers<[1], [0], [0], [1], [0, 0, 1, 1], [], []>} : vector<8x32xbf16>, vector<32x32xbf16>, vector<8x32xf32> -> vector<8x32xf32>
    %c0_29 = arith.constant 0 : index
    %c0_30 = arith.constant 0 : index
    %100 = vector.load %arg9[%c0_29, %c0_30] : memref<1x32xf32, #tpu.memory_space<vmem>>, vector<1x32xf32>
    %101 = vector.broadcast %100 : vector<1x32xf32> to vector<8x32xf32>
    %102 = arith.addf %99, %101 : vector<8x32xf32>
    %103 = vector.shape_cast %102 : vector<8x32xf32> to vector<1x8x32xf32>
    %c0_31 = arith.constant 0 : index
    %c0_32 = arith.constant 0 : index
    %c0_33 = arith.constant 0 : index
    %104 = vector.load %arg10[%c0_31, %c0_32, %c0_33] : memref<1x8x32xf32, #tpu.memory_space<vmem>>, vector<1x8x32xf32>
    tpu.vector_store %arg10[%c0_31, %c0_32, %c0_33], %103 {strides = array<i32>} : memref<1x8x32xf32, #tpu.memory_space<vmem>>, vector<1x8x32xf32>,
    return
  }
  func.func @transform_0(%arg0: i32, %arg1: i32) -> (i32, i32, i32) {
    %c0_i32 = arith.constant 0 : i32
    %c0_i32_0 = arith.constant 0 : i32
    return %arg0, %arg1, %c0_i32 : i32, i32, i32
  }
  func.func @transform_1(%arg0: i32, %arg1: i32) -> (i32, i32, i32) {
    %c0_i32 = arith.constant 0 : i32
    %c0_i32_0 = arith.constant 0 : i32
    %c0_i32_1 = arith.constant 0 : i32
    return %arg0, %c0_i32, %c0_i32_0 : i32, i32, i32
  }
  func.func @transform_2(%arg0: i32, %arg1: i32) -> (i32, i32) {
    %c0_i32 = arith.constant 0 : i32
    %c0_i32_0 = arith.constant 0 : i32
    %c0_i32_1 = arith.constant 0 : i32
    return %c0_i32, %c0_i32_0 : i32, i32
  }
  func.func @transform_3(%arg0: i32, %arg1: i32) -> (i32, i32) {
    %c0_i32 = arith.constant 0 : i32
    %c0_i32_0 = arith.constant 0 : i32
    %c0_i32_1 = arith.constant 0 : i32
    return %c0_i32, %c0_i32_0 : i32, i32
  }
  func.func @transform_4(%arg0: i32, %arg1: i32) -> (i32, i32) {
    %c0_i32 = arith.constant 0 : i32
    %c0_i32_0 = arith.constant 0 : i32
    %c0_i32_1 = arith.constant 0 : i32
    return %c0_i32, %c0_i32_0 : i32, i32
  }
  func.func @transform_5(%arg0: i32, %arg1: i32) -> (i32, i32) {
    %c0_i32 = arith.constant 0 : i32
    %c0_i32_0 = arith.constant 0 : i32
    %c0_i32_1 = arith.constant 0 : i32
    return %c0_i32, %c0_i32_0 : i32, i32
  }
  func.func @transform_6(%arg0: i32, %arg1: i32) -> (i32, i32) {
    %c0_i32 = arith.constant 0 : i32
    %c0_i32_0 = arith.constant 0 : i32
    %c0_i32_1 = arith.constant 0 : i32
    return %c0_i32, %c0_i32_0 : i32, i32
  }
  func.func @transform_7(%arg0: i32, %arg1: i32) -> (i32, i32) {
    %c0_i32 = arith.constant 0 : i32
    %c0_i32_0 = arith.constant 0 : i32
    %c0_i32_1 = arith.constant 0 : i32
    return %c0_i32, %c0_i32_0 : i32, i32
  }
  func.func @transform_8(%arg0: i32, %arg1: i32) -> (i32, i32, i32) {
    %c0_i32 = arith.constant 0 : i32
    %c0_i32_0 = arith.constant 0 : i32
    return %arg0, %arg1, %c0_i32 : i32, i32, i32
  }
}

</mosaic_0001>

<bundles_post_ra>
// kernel: tpu_custom_call.1
= control target key start
LH: loop header
LB: loop body
LE: loop exit
PB: predicated region body
PF: predicated region fallthrough
CT: control target
= control target key end

     0   :  { %s2123_s0 = inlined_call_operand.hbm [shape: f32[2,8,24], index: 0, kind: input, shape index: {}]   ;;  %s2124_s1 = inlined_call_operand.hbm [shape: f32[2,16,20], index: 1, kind: input, shape index: {}]   ;;  %s2125_s2 = inlined_call_operand.hbm [shape: bf16[24,32], index: 2, kind: input, shape index: {}]   ;;  %s2126_s3 = inlined_call_operand.vmem [shape: f32[1,32], index: 3, kind: input, shape index: {}]   ;;  %s2127_s4 = inlined_call_operand.hbm [shape: bf16[20,64], index: 4, kind: input, shape index: {}]   ;;  %s2128_s5 = inlined_call_operand.vmem [shape: f32[1,64], index: 5, kind: input, shape index: {}]   ;;  %s2129_s6 = inlined_call_operand.hbm [shape: bf16[32,32], index: 6, kind: input, shape index: {}]   ;;  %s2130_s7 = inlined_call_operand.vmem [shape: f32[1,32], index: 7, kind: input, shape index: {}]   ;;  %s2131_s8 = inlined_call_operand.hbm [shape: f32[2,8,32], index: 8, kind: output, shape index: {}]  }
   0x1   :  { %2137 = sst [smem:[#allocation22_spill]] %s2123_s0 }
   0x2   :  { %2138 = sst [smem:[#allocation23_spill]] %s2125_s2 }
   0x3   :  { %2139 = sst [smem:[#allocation24_spill]] %s2127_s4 }
   0x4   :  { %2140 = sst [smem:[#allocation25_spill]] %s2129_s6 }
   0x5   :  { %13 = vsyncpa [#allocation4], 0 }
   0x6   :  { %15 = vsyncpa [#allocation4 + $0x1], 0 }
   0x7   :  { %16 = vsyncpa [#allocation7], 0 }
   0x8   :  { %18 = vsyncpa [#allocation7 + $0x1], 0 }
   0x9   :  { %19 = vsyncpa [#allocation10], 0 }
   0xa   :  { %20 = vsyncpa [#allocation5], 0 }
   0xb   :  { %22 = vsyncpa [#allocation5 + $0x1], 0  ;;  %s1811_s27 = smov 0   ;;  %s1813_s28 = smov 0  }
   0xc   :  { %s1815_s29 = smov 0   ;;  %s1817_s30 = smov 0  }
   0xd   :  { %s1819_s9 = smov 0   ;;  %s1821_s10 = smov 0  }
   0xe LB: > { %2141 = sst [smem:[#allocation18_spill]] %s1730_s29  ;;  %s1842_s11 = sadd.s32 4294967295, %s1742_s10   ;;  %s1742_s10 = sphi %s1821_s10, %s28_s10   ;;  %s1738_s9 = sphi %s1819_s9, %s2166_s9   ;;  %s1734_s30 = sphi %s1817_s30, %s2165_s30   ;;  %s1730_s29 = sphi %s1815_s29, %s2164_s29   ;;  %s1726_s28 = sphi %s1813_s28, %s2168_s28   ;;  %s1722_s27 = sphi %s1811_s27, %s2167_s27  }
   0xf   : > { %2142 = sst [smem:[#allocation19_spill]] %s1738_s9  ;;  %s1240_s12 = sadd.s32 4294967294, %s1742_s10  }
  0x10   : > { %p62_p0 = scmp.ne.s32.totalorder %s1726_s28, %s1722_s27  ;;  %p2132_p1 = scmp.eq.s32.totalorder %s1842_s11, 0 }
  0x11   : > { %p246_p3 = scmp.eq.s32.totalorder %s1240_s12, 1  ;;  %p1241_p5 = scmp.ge.s32.totalorder %s1742_s10, 1 }
  0x12   : > { %p1851_p4 = por %p2132_p1, %p62_p0  ;;  %p253_p7 = scmp.lt.s32.totalorder %s1742_s10, 3 }
  0x13   : > { %p1856_p6 = por %p246_p3, %p62_p0  ;;  %s1744_s16 = smov [#allocation8]  }
  0x14   : > { %s2143_s13 = scalar_select %p1851_p4, 1, 0 }
  0x15   : > { %s2144_s14 = scalar_select %p1856_p6, 1, 0 }
  0x16   : > { %p1861_p8 = pnand %p1241_p5, %p253_p7  ;;  %s265_s17 = sshll.u32 %s1744_s16, 4  ;;  %s266_s17 = int_to_ptr.vmem [resolvable:$true] %s265_s17 }
  0x17   : > { %s1745_s19 = smov [#allocation9]   ;;  %s1746_s21 = smov [#allocation11]  }
  0x18   : > { %p1398_p9 = pneg %p1861_p8  ;;  %s281_s20 = sshll.u32 %s1745_s19, 4  ;;  %s282_s20 = int_to_ptr.vmem [resolvable:$true] %s281_s20 }
  0x19   : > { %s297_s22 = sshll.u32 %s1746_s21, 4  ;;  %s1527_s23 = scalar_lea.vmem %s266_s17, 192  ;;  %s298_s22 = int_to_ptr.vmem [resolvable:$true] %s297_s22 }
  0x1a   : > { %p1870_p11 = pnand %p1398_p9, %p2132_p1  ;;  %p1528_p13 = scmp.ne.s32.totalorder %s266_s17, %s1527_s23 }
  0x1b   : > { %p1535_p5 = scmp.lt.s32.totalorder %s266_s17, %s266_s17  ;;  %p1536_p7 = scmp.lt.s32.totalorder %s1527_s23, %s1527_s23 }
  0x1c   : > { %p1518_p12 = pneg %p1870_p11 }
  0x1d   : > { %p1537_p9 = por %p1536_p7, %p1535_p5 }
  0x1e   : > { %p1530_p0 = pnand %p1528_p13, %p1518_p12 }
  0x20   : > { %p1531_p3 = pneg %p1530_p0 }
  0x22   : > { %p1538_p10 = pnand %p1537_p9, %p1531_p3 }
  0x24   : > { %1541 = shalt.err (!%p1538_p10)
}
  0x25   : > { %s1747_s24 = smov 64   ;;  %s1748_s25 = smov 4  }
  0x26   : > { %s2147_s2 = sld [smem:[#allocation23_spill]]  ;;  %s1553_s16 = scalar_lea.vmem %s282_s20, 192 }
  0x27   : > { %p1554_p1 = scmp.ne.s32.totalorder %s282_s20, %s1553_s16  ;;  %p1561_p2 = scmp.lt.s32.totalorder %s282_s20, %s282_s20 }
  0x28   : > { %p1562_p6 = scmp.lt.s32.totalorder %s1553_s16, %s1553_s16 }
  0x29   : > { %p1556_p13 = pnand %p1554_p1, %p1518_p12 }
  0x2a   : > { %p1563_p5 = por %p1562_p6, %p1561_p2 }
  0x2b   : > { %p1557_p0 = pneg %p1556_p13 }
  0x2c   : > { %1401 = dma.hbm_to_vmem [thread:$0]  (!%p1870_p11), %s2147_s2, 192, %s266_s17, [#allocation7], %s1747_s24, %s1747_s24, %s1748_s25  }
  0x2d   : > { %p1564_p3 = pnand %p1563_p5, %p1557_p0 }
  0x2f   : > { %1567 = shalt.err (!%p1564_p3)
}
  0x30   : > { %s2148_s4 = sld [smem:[#allocation24_spill]]  ;;  %s1579_s17 = scalar_lea.vmem %s298_s22, 256 }
  0x31   : > { %p1580_p10 = scmp.ne.s32.totalorder %s298_s22, %s1579_s17  ;;  %p1587_p9 = scmp.lt.s32.totalorder %s298_s22, %s298_s22 }
  0x32   : > { %p1588_p13 = scmp.lt.s32.totalorder %s1579_s17, %s1579_s17 }
  0x33   : > { %p1582_p7 = pnand %p1580_p10, %p1518_p12 }
  0x34   : > { %p1589_p4 = por %p1588_p13, %p1587_p9 }
  0x35   : > { %p1583_p1 = pneg %p1582_p7 }
  0x36   : > { %1404 = dma.hbm_to_vmem [thread:$0]  (!%p1870_p11), %s2148_s4, 192, %s282_s20, [#allocation10], %s1747_s24, %s1747_s24, %s1748_s25  }
  0x37   : > { %p1590_p2 = pnand %p1589_p4, %p1583_p1 }
  0x39   : > { %1593 = shalt.err (!%p1590_p2)
}
  0x3a   : > { %s2149_s6 = sld [smem:[#allocation25_spill]]  ;;  %s49_s20 = sadd.s32 1, %s1730_s29 }
  0x3b   : > { %s40_s12 = sadd.s32 1, %s1738_s9  ;;  %p56_p4 = scmp.ne.s32.totalorder %s1730_s29, %s1726_s28 }
  0x3c   : > { %p42_p6 = scmp.ge.s32.totalorder %s40_s12, 2  ;;  %p57_p12 = scmp.eq.s32.totalorder %s1742_s10, 0 }
  0x3d   : > { %p2150_p0 = scmp.eq.s32.totalorder %s1842_s11, 1  ;;  %p1422_p3 = scmp.lt.s32.totalorder %s1742_s10, 2 }
  0x3e   : > { %s2170_s12 = smov (%p42_p6, %s40_s12), 0  ;;  %p58_p10 = por %p57_p12, %p56_p4 }
  0x3f   : > { %p1907_p5 = por %p2150_p0, %p56_p4  ;;  %2152 = sst [smem:[#allocation20_spill]] %s2170_s12 }
  0x40   : > { %1407 = dma.hbm_to_vmem [thread:$0]  (!%p1870_p11), %s2149_s6, 256, %s298_s22, [#allocation10], %s1747_s24, %s1747_s24, %s1748_s25  }
  0x41   : > { %s1915_s16 = sand.u32 1, %s1730_s29   ;;  %s44_s22 = ssub.s32 %s1738_s9, %s2170_s12 }
  0x42   : > { %p47_p11 = scmp.eq.s32.totalorder %s44_s22, 0  ;;  %s1246_s24 = sshll.u32 %s1915_s16, 3 }
  0x43   : > { %s1247_s25 = sshll.u32 %s1738_s9, 7  ;;  %s2154_s0 = sld [smem:[#allocation22_spill]] }
  0x44   : > { %s1922_s19 = scalar_select %p47_p11, %s1730_s29, %s49_s20  }
  0x45   : > { %s318_s26 = scalar_lea.vmem [#allocation3], %s1246_s24  ;;  %p1929_p7 = pnand %p1422_p3, %p58_p10 }
  0x46   : > { %2153 = sst [smem:[#allocation21_spill]] %s1922_s19  ;;  %s326_s2 = sshll.u32 %s318_s26, 4  ;;  %s327_s2 = int_to_ptr.vmem [resolvable:$true] %s326_s2 }
  0x47   : > { %s1248_s6 = sshll.u32 %s1915_s16, 4  ;;  %s1282_s22 = sshll.u32 %s1738_s9, 8 }
  0x48   : > { %s315_s12 = scalar_lea.sflag [#allocation4], %s1915_s16  ;;  %p1596_p1 = pneg %p1929_p7 }
  0x49   : > { %s324_s23 = scalar_lea.hbm %s2154_s0, %s1247_s25  ;;  %s1607_s20 = scalar_lea.vmem %s327_s2, 128 }
  0x4a   : > { %p1608_p9 = scmp.ne.s32.totalorder %s327_s2, %s1607_s20  ;;  %s1749_s24 = smov [#allocation3]  }
  0x4b   : > { %s1612_s25 = sshll.u32 %s1749_s24, 4  ;;  %s1613_s25 = int_to_ptr.vmem [resolvable:$false] %s1612_s25 }
  0x4c   : > { %p1610_p13 = pnand %p1608_p9, %p1596_p1  ;;  %s1614_s21 = scalar_lea.vmem %s1613_s25, 256 }
  0x4d   : > { %p1615_p4 = scmp.lt.s32.totalorder %s327_s2, %s1613_s25  ;;  %p1616_p6 = scmp.lt.s32.totalorder %s1614_s21, %s1607_s20 }
  0x4e   : > { %p1611_p2 = pneg %p1610_p13 }
  0x4f   : > { %p1617_p12 = por %p1616_p6, %p1615_p4 }
  0x51   : > { %p1618_p0 = pnand %p1617_p12, %p1611_p2 }
  0x53   : > { %1621 = shalt.err (!%p1618_p0)
}
  0x54   : > { %1411 = dma.hbm_to_vmem [thread:$0]  (!%p1929_p7), %s324_s23, 128, %s327_s2, %s315_s12  }
  0x55   : > { %s337_s16 = scalar_lea.vmem [#allocation6], %s1248_s6  ;;  %s333_s26 = sand.u32 1, %s1742_s10  }
  0x56   : > { %s344_s17 = sshll.u32 %s337_s16, 4  ;;  %s343_s24 = scalar_lea.hbm %s2124_s1, %s1282_s22  ;;  %s345_s17 = int_to_ptr.vmem [resolvable:$true] %s344_s17 }
  0x57   : > { %s334_s19 = scalar_lea.sflag [#allocation7], %s333_s26  ;;  %s1635_s29 = scalar_lea.vmem %s345_s17, 256 }
  0x58   : > { %p1636_p3 = scmp.ne.s32.totalorder %s345_s17, %s1635_s29  ;;  %s1750_s20 = smov [#allocation6]  }
  0x59   : > { %s1640_s25 = sshll.u32 %s1750_s20, 4  ;;  %s1641_s25 = int_to_ptr.vmem [resolvable:$false] %s1640_s25 }
  0x5a   : > { %p1638_p10 = pnand %p1636_p3, %p1596_p1  ;;  %s1642_s21 = scalar_lea.vmem %s1641_s25, 512 }
  0x5b   : > { %p1643_p9 = scmp.lt.s32.totalorder %s345_s17, %s1641_s25  ;;  %p1644_p13 = scmp.lt.s32.totalorder %s1642_s21, %s1635_s29 }
  0x5c   : > { %p1639_p11 = pneg %p1638_p10 }
  0x5d   : > { %p1645_p2 = por %p1644_p13, %p1643_p9 }
  0x5f   : > { %p1646_p4 = pnand %p1645_p2, %p1639_p11 }
  0x61   : > { %1649 = shalt.err (!%p1646_p4)
}
  0x62   : > { %s1751_s2 = smov 128   ;;  %s1752_s0 = smov 8  }
  0x63   : > { %1414 = dma.hbm_to_vmem [thread:$0]  (!%p1929_p7), %s343_s24, 256, %s345_s17, %s334_s19, %s1751_s2, %s1751_s2, %s1752_s0  }
  0x64   : > { %356 = sbr.rel (%p1861_p8) target bundleno = 1508 (0x5e4), region = 52  ;;  %s1955_s6 = sand.u32 (!%p1861_p8), 1, %s1726_s28  }
  0x65   : > { %s1252_s9 = sshll.u32 (!%p1861_p8), %s1955_s6, 3  ;;  %s359_s29 = scalar_lea.sflag (!%p1861_p8), [#allocation4], %s1955_s6 }
  0x66   : > { %s1961_s12 = scalar_lea.vmem (!%p1861_p8), [#allocation3], %s1252_s9  ;;  %p2156_p1 = scmp.ne.s32.totalorder (!%p1861_p8), %s2143_s13, 0 }
  0x69   : > { %1701 = dma.done.wait (%p2156_p1), %s359_s29, 128  }
  0x6a   : > { %1703 = vsyncadd (%p2156_p1), %s359_s29, 4294967168  ;;  %s367_s4 = sand.u32 1, %s1842_s11   ;;  %s1253_s15 = sshll.u32 %s1955_s6, 4 }
  0x6b   : > { %s368_s19 = scalar_lea.sflag [#allocation7], %s367_s4  ;;  %s371_s23 = scalar_lea.vmem [#allocation6], %s1253_s15 }
  0x6c   : > { %1705 = dma.done.wait (%p2156_p1), %s368_s19, 256  }
  0x6d   : > { %1707 = vsyncadd (%p2156_p1), %s368_s19, 4294967040  ;;  %p2157_p8 = scmp.eq.s32.totalorder %s1842_s11, 0 }
  0x6f   : > { %1709 = dma.done.wait (%p2157_p8), [#allocation7], 192   ;;  %p2158_p7 = pmov %p2157_p8 }
  0x71   : > { %1711 = vsyncadd (%p2158_p7), [#allocation7], 4294967104  ;;  %p2159_p6 = pmov %p2158_p7 }
  0x73   : > { %1713 = dma.done.wait (%p2159_p6), [#allocation10], 448   ;;  %p2160_p12 = pmov %p2159_p6 }
  0x74   : > { %v1753_v0 = vmov 0.0   ;;  %vm1754_vm0 = vmmov 0   ;;  %vm452_vm1 = vcmask 1041408   ;;  %v1494_v1 = vld [vmem:[#allocation9 + $0x8] ss:$0 sps:$4 sm:$0x33]  }
  0x75   : > { %1715 = vsyncadd (%p2160_p12), [#allocation10], 4294966848  ;;  %1308 = vmatprep.subr.bf16.mxu0 %v1753_v0  ;;  %1312 = vmatprep.mubr.msk.bf16.mxu0 %vm1754_vm0, %v1753_v0  ;;  %v1495_v2 = vld [vmem:[#allocation9] sm:$0xff]   ;;  %vm525_vm2 = vcmask 1043456   ;;  %v454_v3 = vsel %vm452_vm1, %v1494_v1, 0  ;;  %v1497_v8 = vld [vmem:[#allocation8] sm:$0xff]  }
  0x76   : > { %1316 = vmatprep.subr.bf16.mxu1 %v1753_v0  ;;  %1320 = vmatprep.mubr.msk.bf16.mxu1 %vm1754_vm0, %v1753_v0  ;;  %v426_v4 = vld [vmem:[%s371_s23] sm:$0xff]  ;;  %v1496_v5 = vld [vmem:[#allocation8 + $0x8] ss:$0 sps:$4 sm:$0xff]   ;;  %v500_v9 = vld [vmem:[%s1961_s12] sm:$0xff]  ;;  %vm448_vm3 = vcmask 162816   ;;  %vm521_vm4 = vcmask 195584  }
  0x77   : > { %1309 = vmatpush3.bf16.msra.mxu0 %v454_v3  ;;  %v427_v6 = vld [vmem:[%s371_s23 + $0x8] sm:$0xff]  ;;  %v527_v7 = vsel %vm525_vm2, %v1496_v5, 0  ;;  %v501_v11 = vpack.c.bf16 %v500_v9, %v500_v9  ;;  %v1258_v12 = vld [vmem:[%s2128_s5] ss:$0 sm:$0xff]  ;;  %vm497_vm5 = vcmask 523264   ;;  %vm573_vm6 = vcmask 64512  }
  0x78   : > { %1310 = vmatprep.subr.bf16.mxu0 %v1753_v0  ;;  %1317 = vmatpush3.bf16.msra.mxu1 %v527_v7  ;;  %v428_v10 = vpack.c.bf16 %v427_v6, %v426_v4  ;;  %v1262_v23 = vld [vmem:[%s2126_s3] ss:$0 sm:$0xff]  ;;  %s1755_s17 = smov 112   ;;  %s1756_s26 = smov 120   ;;  %vm620_vm7 = vcmask 130048   ;;  %vm1048_vm8 = vcmask 261120  }
  0x79   : > { %1318 = vmatprep.subr.bf16.mxu1 %v1753_v0  ;;  %s1757_s24 = smov 104   ;;  %s1758_s20 = smov 96  }
  0x7a   : > { %s1759_s25 = smov 80   ;;  %s1760_s21 = smov 72  }
  0x7b   : > { %1311 = vmatpush3.bf16.msra.mxu0 %v1495_v2  ;;  %s1761_s2 = smov 88   ;;  %s1762_s0 = smov 8  }
  0x7c   : > { %1324 = vmatprep.subr.bf16.mxu0 %v1753_v0  ;;  %1319 = vmatpush3.bf16.msra.mxu1 %v1497_v8  ;;  %s1763_s29 = smov 16   ;;  %s1764_s12 = smov 24  }
  0x7d   : > { %1330 = vmatprep.subr.bf16.mxu1 %v1753_v0  ;;  %s1279_s19 = sshll.u32 %s1734_s30, 7  ;;  %s420_s23 = scalar_lea.vmem [#allocation12], %s1252_s9 }
  0x7e   : > { %1313 = vmatmul.mubr.msk.bf16.vlgmr.msra.gmra.mxu0 %vm448_vm3, %v428_v10  ;;  %s1108_s11 = sshll.u32 %s420_s23, 4  ;;  %s2075_s16 = scalar_lea.hbm %s2131_s8, %s1279_s19  ;;  %s2077_s11 = int_to_ptr.vmem [resolvable:$true] %s1108_s11 }
  0x7f   : > { %1326 = vmatprep.mubr.msk.bf16.mxu0 %vm1754_vm0, %v1753_v0  ;;  %1321 = vmatmul.mubr.msk.bf16.vlgmr.msra.gmra.mxu1 %vm521_vm4, %v501_v11  ;;  %s1650_s30 = scalar_lea.vmem %s2077_s11, 128  ;;  %s1765_s9 = smov [#allocation12]  }
  0x80   : > { %1332 = vmatprep.mubr.msk.bf16.mxu1 %vm1754_vm0, %v1753_v0  ;;  %p1651_p0 = scmp.ne.s32.totalorder %s2077_s11, %s1650_s30 }
  0x82   : > { %p1652_p3 = pnand %p1651_p0, %p1907_p5 }
  0x84   : > { %p1653_p10 = pneg %p1652_p3 }
 0x13e   : > { %v490_v13 = vpop.f32.mrf.mxu0 }
 0x13f   : > { %v491_v14 = vadd.f32 %v1258_v12, %v490_v13  ;;  %v563_v16 = vpop.f32.mrf.mxu1 }
 0x140   : > { %v1314_v15 = vpop.f32.mrf.mxu0  ;;  %v2003_v24 = vadd.f32 %v1262_v23, %v563_v16 }
 0x141   : > { %498 = vst.msk [vmem:[#allocation2] sm:$0xff] %vm497_vm5, %v491_v14  ;;  %v1322_v18 = vpop.f32.mrf.mxu1 }
 0x142   : > { %v493_v17 = vpop.f32.mrf.mxu0  ;;  %v571_v29 = vpack.c.bf16 %v2003_v24, %v2003_v24 }
 0x143   : > { %v494_v19 = vadd.f32 %v1258_v12, %v493_v17  ;;  %v566_v21 = vpop.f32.mrf.mxu1 }
 0x144   : > { %v1315_v20 = vpop.f32.mrf.mxu0 }
 0x145   : > { %499 = vst.msk [vmem:[#allocation2 + $0x8] sm:$0xff] %vm497_vm5, %v494_v19  ;;  %v1323_v22 = vpop.f32.mrf.mxu1 }
 0x148   : > { %v569_v25 = vld [vmem:[#allocation2] sm:$0xff] }
 0x14c   : > { %v570_v26 = vld [vmem:[#allocation2 + $0x8] sm:$0xff] }
 0x14d   : > { %v2005_v27 = vpack.c.bf16 %v570_v26, %v569_v25 }
 0x14f   : > { %797 = vrot.lane.b32.xlu1 %v2005_v27, %s1755_s17  ;;  %684 = vrot.lane.b32.xlu0 %v2005_v27, %s1756_s26  ;;  %v578_v28 = vsel %vm573_vm6, %v2005_v27, 0 }
 0x150   : > { %1325 = vmatpush3.bf16.xpose.msra.mxu0 %v578_v28 }
 0x151   : > { %1336 = vmatprep.subr.bf16.mxu0 %v1753_v0 }
 0x153   : > { %795 = vrot.lane.b32.xlu1 %v571_v29, %s1755_s17  ;;  %682 = vrot.lane.b32.xlu0 %v571_v29, %s1756_s26  ;;  %s1094_s17 = scalar_lea.sflag [#allocation5], %s1955_s6  ;;  %s1654_s26 = sshll.u32 %s1765_s9, 4  ;;  %s1655_s26 = int_to_ptr.vmem [resolvable:$false] %s1654_s26 }
 0x154   : > { %p1657_p11 = scmp.lt.s32.totalorder %s2077_s11, %s1655_s26 }
 0x157   : > { %908 = vrot.lane.b32.xlu1 %v571_v29, %s1757_s24  ;;  %910 = vrot.lane.b32.xlu0 %v2005_v27, %s1757_s24  ;;  %s1656_s24 = scalar_lea.vmem %s1655_s26, 256 }
 0x158   : > { %1327 = vmatmul.mubr.msk.bf16.vlgmr.msra.gmra.mxu0 %vm573_vm6, %v571_v29  ;;  %p1658_p9 = scmp.lt.s32.totalorder %s1656_s24, %s1650_s30 }
 0x159   : > { %1338 = vmatprep.mubr.msk.bf16.mxu0 %vm1754_vm0, %v1753_v0 }
 0x15a   : > { %p1659_p13 = por %p1658_p9, %p1657_p11 }
 0x15c   : > { %p1660_p2 = pnand %p1659_p13, %p1653_p10 }
 0x1c1   : > { %v685_v30 = vpop.permute.xlu0 %684  ;;  %v798_v32 = vpop.permute.xlu1 %797 }
 0x1c2   : > { %v690_v31 = vsel %vm573_vm6, %v685_v30, 0  ;;  %v803_v34 = vsel %vm573_vm6, %v798_v32, 0 }
 0x1c3   : > { %1337 = vmatpush3.bf16.xpose.msra.mxu0 %v690_v31 }
 0x1c4   : > { %1348 = vmatprep.subr.bf16.mxu0 %v1753_v0 }
 0x1c5   : > { %v683_v33 = vpop.permute.xlu0 %682  ;;  %v796_v36 = vpop.permute.xlu1 %795 }
 0x1c9   : > { %v911_v35 = vpop.permute.xlu0 %910  ;;  %v909_v38 = vpop.permute.xlu1 %908 }
 0x1ca   : > { %1339 = vmatmul.mubr.msk.bf16.vlgmr.msra.gmra.mxu0 %vm573_vm6, %v683_v33  ;;  %v916_v37 = vsel %vm573_vm6, %v911_v35, 0 }
 0x1cb   : > { %1349 = vmatpush3.bf16.xpose.msra.mxu0 %v803_v34  ;;  %1350 = vmatprep.mubr.msk.bf16.mxu0 %vm1754_vm0, %v1753_v0 }
 0x1cc   : > { %1360 = vmatprep.subr.bf16.mxu0 %v1753_v0 }
 0x1d2   : > { %1351 = vmatmul.mubr.msk.bf16.vlgmr.msra.gmra.mxu0 %vm573_vm6, %v796_v36 }
 0x1d3   : > { %1361 = vmatpush3.bf16.xpose.msra.mxu0 %v916_v37  ;;  %1362 = vmatprep.mubr.msk.bf16.mxu0 %vm1754_vm0, %v1753_v0 }
 0x1d4   : > { %1372 = vmatprep.subr.bf16.mxu0 %v1753_v0 }
 0x1da   : > { %1363 = vmatmul.mubr.msk.bf16.vlgmr.msra.gmra.mxu0 %vm573_vm6, %v909_v38 }
 0x1db   : > { %1376 = vmatprep.mubr.msk.bf16.mxu0 %vm1754_vm0, %v1753_v0 }
 0x218   : > { %v614_v39 = vpop.f32.mrf.mxu0 }
 0x219   : > { %v621_v40 = vsel %vm620_vm7, %v614_v39, -inf }
 0x21a   : > { %622 = vmax.xlane.f32.xlu0 %v621_v40  ;;  %v1328_v41 = vpop.f32.mrf.mxu0 }
 0x21b   : > { %v1498_v41 = vld [vmem:[#allocation11 + $0x8] sm:$0xff]  }
 0x21c   : > { %v617_v42 = vpop.f32.mrf.mxu0  ;;  %1373 = vmatpush3.bf16.msra.mxu0 %v1498_v41 }
 0x21d   : > { %1374 = vmatprep.subr.bf16.mxu0 %v1753_v0 }
 0x21e   : > { %v1329_v43 = vpop.f32.mrf.mxu0 }
 0x28a   : > { %v726_v44 = vpop.f32.mrf.mxu0 }
 0x28b   : > { %v732_v45 = vsel %vm620_vm7, %v726_v44, -inf }
 0x28c   : > { %733 = vmax.xlane.f32.xlu1 %v732_v45  ;;  %v1340_v46 = vpop.f32.mrf.mxu0  ;;  %v1499_v45 = vld [vmem:[#allocation11] sm:$0xff]  }
 0x28d   : > { %1375 = vmatpush3.bf16.msra.mxu0 %v1499_v45 }
 0x28e   : > { %v729_v47 = vpop.f32.mrf.mxu0 }
 0x290   : > { %v1341_v48 = vpop.f32.mrf.mxu0 }
 0x292   : > { %v839_v49 = vpop.f32.mrf.mxu0 }
 0x293   : > { %v845_v50 = vsel %vm620_vm7, %v839_v49, -inf }
 0x294   : > { %846 = vmax.xlane.f32.xlu0 %v845_v50  ;;  %v1352_v51 = vpop.f32.mrf.mxu0 }
 0x296   : > { %v842_v52 = vpop.f32.mrf.mxu0 }
 0x298   : > { %v1353_v53 = vpop.f32.mrf.mxu0 }
 0x29a   : > { %v952_v54 = vpop.f32.mrf.mxu0 }
 0x29b   : > { %v958_v55 = vsel %vm620_vm7, %v952_v54, -inf }
 0x29c   : > { %959 = vmax.xlane.f32.xlu0 %v958_v55  ;;  %v1364_v56 = vpop.f32.mrf.mxu0 }
 0x29e   : > { %v955_v57 = vpop.f32.mrf.mxu0 }
 0x2a0   : > { %v1365_v58 = vpop.f32.mrf.mxu0 }
 0x2a3   : > { %v623_v59 = vpop.xlane.xlu0 %622 }
 0x2a4   : > { %v624_v60 = vsub.f32 %v614_v39, %v623_v59 }
 0x2a6   : > { %v625_v61 = vmul.f32 1.442695, %v624_v60 }
 0x2a8   : > { %1500 = vpow2.f32 %v625_v61 }
 0x2b5   : > { %v1501_v62 = vpop.eup %1500 }
 0x2b6   : > { %v627_v63 = vsel %vm620_vm7, %v1501_v62, 0.0 }
 0x2b7   : > { %628 = vadd.xlane.f32.xlu1 %v627_v63 }
 0x2c8   : > { %634 = vrot.lane.b32.xlu1 %v2005_v27, %s1758_s20 }
 0x315   : > { %v734_v1 = vpop.xlane.xlu1 %733 }
 0x316   : > { %v735_v2 = vsub.f32 %v726_v44, %v734_v1 }
 0x318   : > { %v736_v3 = vmul.f32 1.442695, %v735_v2  ;;  %v1274_v2 = vld [vmem:[%s2130_s7] ss:$0 sm:$0xff] }
 0x31a   : > { %1502 = vpow2.f32 %v736_v3 }
 0x31d   : > { %v847_v4 = vpop.xlane.xlu0 %846 }
 0x31e   : > { %v848_v5 = vsub.f32 %v839_v49, %v847_v4 }
 0x320   : > { %v849_v6 = vmul.f32 1.442695, %v848_v5 }
 0x322   : > { %1504 = vpow2.f32 %v849_v6 }
 0x325   : > { %v960_v7 = vpop.xlane.xlu0 %959 }
 0x326   : > { %v961_v8 = vsub.f32 %v952_v54, %v960_v7 }
 0x327   : > { %v1503_v9 = vpop.eup %1502 }
 0x328   : > { %v962_v10 = vmul.f32 1.442695, %v961_v8  ;;  %v738_v11 = vsel %vm620_vm7, %v1503_v9, 0.0 }
 0x329   : > { %739 = vadd.xlane.f32.xlu0 %v738_v11 }
 0x32a   : > { %1506 = vpow2.f32 %v962_v10 }
 0x32f   : > { %v1505_v12 = vpop.eup %1504 }
 0x330   : > { %v851_v13 = vsel %vm620_vm7, %v1505_v12, 0.0 }
 0x331   : > { %852 = vadd.xlane.f32.xlu1 %v851_v13 }
 0x337   : > { %v1507_v14 = vpop.eup %1506 }
 0x338   : > { %v964_v15 = vsel %vm620_vm7, %v1507_v14, 0.0 }
 0x339   : > { %965 = vadd.xlane.f32.xlu0 %v964_v15 }
 0x340   : > { %v629_v16 = vpop.xlane.xlu1 %628 }
 0x341   : > { %1508 = vrcp.f32 %v629_v16 }
 0x342   : > { %857 = vrot.lane.b32.xlu1 %v2005_v27, %s1759_s25 }
 0x344   : > { %v635_v17 = vpop.permute.xlu1 %634 }
 0x345   : > { %1331 = vmatpush3.bf16.msra.mxu1 %v635_v17 }
 0x346   : > { %970 = vrot.lane.b32.xlu1 %v2005_v27, %s1760_s21  ;;  %1342 = vmatprep.subr.bf16.mxu1 %v1753_v0 }
 0x34e   : > { %v1509_v18 = vpop.eup %1508 }
 0x34f   : > { %744 = vrot.lane.b32.xlu0 %v2005_v27, %s1761_s2  ;;  %v631_v19 = vmul.f32 %v1509_v18, %v1501_v62 }
 0x351   : > { %v632_v20 = vpack.c.bf16 %v631_v19, %v631_v19 }
 0x353   : > { %1333 = vmatmul.mubr.msk.bf16.vlgmr.msra.gmra.mxu1 %vm620_vm7, %v632_v20 }
 0x354   : > { %1344 = vmatprep.mubr.msk.bf16.mxu1 %vm1754_vm0, %v1753_v0 }
 0x3b2   : > { %v740_v21 = vpop.xlane.xlu0 %739 }
 0x3b3   : > { %1510 = vrcp.f32 %v740_v21 }
 0x3ba   : > { %v853_v22 = vpop.xlane.xlu1 %852 }
 0x3bb   : > { %1512 = vrcp.f32 %v853_v22 }
 0x3be   : > { %v858_v30 = vpop.permute.xlu1 %857 }
 0x3c0   : > { %v1511_v23 = vpop.eup %1510 }
 0x3c1   : > { %v742_v26 = vmul.f32 %v1511_v23, %v1503_v9 }
 0x3c2   : > { %v966_v25 = vpop.xlane.xlu0 %965  ;;  %v971_v34 = vpop.permute.xlu1 %970 }
 0x3c3   : > { %1514 = vrcp.f32 %v966_v25  ;;  %v743_v29 = vpack.c.bf16 %v742_v26, %v742_v26 }
 0x3c6   : > { %v745_v28 = vpop.permute.xlu0 %744 }
 0x3c7   : > { %1343 = vmatpush3.bf16.msra.mxu1 %v745_v28 }
 0x3c8   : > { %1354 = vmatprep.subr.bf16.mxu1 %v1753_v0  ;;  %v1513_v27 = vpop.eup %1512 }
 0x3c9   : > { %v855_v31 = vmul.f32 %v1513_v27, %v1505_v12 }
 0x3ca   : > { %1345 = vmatmul.mubr.msk.bf16.vlgmr.msra.gmra.mxu1 %vm620_vm7, %v743_v29 }
 0x3cb   : > { %1355 = vmatpush3.bf16.msra.mxu1 %v858_v30  ;;  %1356 = vmatprep.mubr.msk.bf16.mxu1 %vm1754_vm0, %v1753_v0  ;;  %v856_v32 = vpack.c.bf16 %v855_v31, %v855_v31 }
 0x3cc   : > { %1366 = vmatprep.subr.bf16.mxu1 %v1753_v0 }
 0x3d0   : > { %v1515_v33 = vpop.eup %1514 }
 0x3d1   : > { %v968_v35 = vmul.f32 %v1515_v33, %v1507_v14 }
 0x3d2   : > { %1357 = vmatmul.mubr.msk.bf16.vlgmr.msra.gmra.mxu1 %vm620_vm7, %v856_v32 }
 0x3d3   : > { %1367 = vmatpush3.bf16.msra.mxu1 %v971_v34  ;;  %1368 = vmatprep.mubr.msk.bf16.mxu1 %vm1754_vm0, %v1753_v0  ;;  %v969_v36 = vpack.c.bf16 %v968_v35, %v968_v35 }
 0x3da   : > { %1369 = vmatmul.mubr.msk.bf16.vlgmr.msra.gmra.mxu1 %vm620_vm7, %v969_v36 }
 0x413   : > { %v674_v37 = vpop.f32.mrf.mxu1 }
 0x414   : > { %v680_v58 = vadd.f32 %v674_v37, %v2003_v24 }
 0x415   : > { %v1334_v38 = vpop.f32.mrf.mxu1 }
 0x417   : > { %v677_v39 = vpop.f32.mrf.mxu1 }
 0x419   : > { %v1335_v40 = vpop.f32.mrf.mxu1 }
 0x48a   : > { %v784_v42 = vpop.f32.mrf.mxu1 }
 0x48b   : > { %791 = vrot.lane.b32.xlu0 %v784_v42, %s1762_s0 }
 0x48c   : > { %v1346_v43 = vpop.f32.mrf.mxu1 }
 0x48e   : > { %v787_v44 = vpop.f32.mrf.mxu1 }
 0x490   : > { %v1347_v46 = vpop.f32.mrf.mxu1 }
 0x492   : > { %v897_v47 = vpop.f32.mrf.mxu1 }
 0x493   : > { %904 = vrot.lane.b32.xlu1 %v897_v47, %s1763_s29 }
 0x494   : > { %v1358_v48 = vpop.f32.mrf.mxu1 }
 0x496   : > { %v900_v49 = vpop.f32.mrf.mxu1 }
 0x498   : > { %v1359_v50 = vpop.f32.mrf.mxu1 }
 0x49a   : > { %v1010_v51 = vpop.f32.mrf.mxu1 }
 0x49b   : > { %1017 = vrot.lane.b32.xlu0 %v1010_v51, %s1764_s12 }
 0x49c   : > { %v1370_v52 = vpop.f32.mrf.mxu1 }
 0x49e   : > { %v1013_v53 = vpop.f32.mrf.mxu1 }
 0x4a0   : > { %v1371_v54 = vpop.f32.mrf.mxu1 }
 0x4fd   : > { %v792_v0 = vpop.permute.xlu0 %791 }
 0x4fe   : > { %v794_v56 = vadd.f32 %v792_v0, %v2003_v24 }
 0x500   : > { %v1021_v60 = vsel %vm573_vm6, %v680_v58, %v794_v56 }
 0x505   : > { %v905_v55 = vpop.permute.xlu1 %904 }
 0x506   : > { %v907_v57 = vadd.f32 %v905_v55, %v2003_v24 }
 0x508   : > { %v1022_v62 = vsel %vm620_vm7, %v1021_v60, %v907_v57 }
 0x50d   : > { %v1018_v59 = vpop.permute.xlu0 %1017 }
 0x50e   : > { %v1020_v61 = vadd.f32 %v1018_v59, %v2003_v24 }
 0x510   : > { %v1023_v63 = vsel %vm521_vm4, %v1022_v62, %v1020_v61 }
 0x511   : > { %v1024_v1 = vpack.c.bf16 %v1023_v63, %v1023_v63 }
 0x513   : > { %1377 = vmatmul.mubr.msk.bf16.vlgmr.msra.gmra.mxu0 %vm1048_vm8, %v1024_v1 }
 0x5d3   : > { %v1086_v3 = vpop.f32.mrf.mxu0 }
 0x5d4   : > { %v1087_v4 = vadd.f32 %v1274_v2, %v1086_v3 }
 0x5d5   : > { %v1378_v24 = vpop.f32.mrf.mxu0 }
 0x5d6   : > { %1092 = vst.msk [vmem:[%s420_s23] sm:$0xff] %vm1048_vm8, %v1087_v4 }
 0x5d7   : > { %v1089_v5 = vpop.f32.mrf.mxu0 }
 0x5d8   : > { %1663 = shalt.err (!%p1660_p2)
}
 0x5d9   : > { %s1664_s20 = scalar_lea.hbm %s2075_s16, 128  ;;  %s1668_s21 = scalar_lea.hbm %s2131_s8, 256 }
 0x5da   : > { %p1665_p4 = scmp.ne.s32.totalorder %s2075_s16, %s1664_s20  ;;  %p1669_p7 = scmp.lt.s32.totalorder %s2075_s16, %s2131_s8 }
 0x5db   : > { %p1670_p6 = scmp.lt.s32.totalorder %s1668_s21, %s1664_s20 }
 0x5dc   : > { %p1666_p1 = pnand %p1665_p4, %p1907_p5 }
 0x5dd   : > { %p1671_p12 = por %p1670_p6, %p1669_p7 }
 0x5de   : > { %p1667_p8 = pneg %p1666_p1 }
 0x5e0   : > { %p1672_p0 = pnand %p1671_p12, %p1667_p8 }
 0x5e2   : > { %1675 = shalt.err (!%p1672_p0)
}
 0x5e3   : > { %1396 = dma.vmem_to_hbm [thread:$0]  (%p1907_p5), %s2077_s11, 128, %s2075_s16, %s1094_s17   ;;  %v1379_v6 = vpop.f32.mrf.mxu0 }
 0x5e4 PF: > { %s1120_s29 = sand.u32 1, %s1722_s27   ;;  %p2161_p3 = scmp.ne.s32.totalorder %s2144_s14, 0 }
 0x5e5   : > { %p2162_p10 = scmp.ge.s32.totalorder %s1742_s10, 2  ;;  %s1121_s12 = scalar_lea.sflag [#allocation5], %s1120_s29 }
 0x5e7   : > { %p1416_p11 = pnand %p2162_p10, %p2161_p3 }
 0x5e9   : > { %p1417_p9 = pneg %p1416_p11 }
 0x5eb   : > { %1717 = dma.done.wait (%p1417_p9), %s1121_s12, 128  }
 0x5ec   : > { %1719 = vsyncadd (%p1417_p9), %s1121_s12, 4294967168  ;;  %s28_s10 = sadd.s32 1, %s1742_s10   ;;  %s2163_s18 = sld [smem:[#allocation18_spill]] }
 0x5ed   : > { %p25_p13 = scmp.ge.s32.totalorder %s28_s10, 4   ;;  %s2164_s29 = sld [smem:[#allocation21_spill]] }
 0x5ee   : > { %s2165_s30 = sld [smem:[#allocation19_spill]]  ;;  %s2167_s27 = smov %s1726_s28 }
 0x5ef   : > { %s2166_s9 = sld [smem:[#allocation20_spill]]  ;;  %27 = sbr.rel (!%p25_p13) target bundleno = 14 (0xe), region = 126 }
 0x5f2   : > { %s2168_s28 = smov %s2163_s18 }
 0x5f4   :  { %1126 = vsyncpa [#allocation4], 1 }
 0x5f5   :  { %1128 = vsyncpa [#allocation4 + $0x1], 1 }
 0x5f6   :  { %1129 = vsyncpa [#allocation7], 1 }
 0x5f7   :  { %1131 = vsyncpa [#allocation7 + $0x1], 1 }
 0x5f8   :  { %1132 = vsyncpa [#allocation10], 1 }
 0x5f9   :  { %1133 = vsyncpa [#allocation5], 1 }
 0x5fa   :  { %1135 = vsyncpa [#allocation5 + $0x1], 1 }

</bundles_post_ra>
